<compile_context>
chip_gen: v7x
topology: tpu7x:2x2x1
jax: 0.10.0
libtpu: 0.0.40
codegen_flags: <defaults>
</compile_context>

<pallas_src>
import functools

import jax
import jax.numpy as jnp
from jax.experimental import pallas as pl
from jax.experimental.pallas import tpu as pltpu


_LANE = 128                     # lane width
_SUBLANE = 8                    # f32 sublane quantum
_MAX_TB = 2048                  # max batch-tile rows (8 MiB f32 x-tile)
_MIN_SPLIT = 256                # batches >= this get >= 2 grid steps (v7x dual-TC)
_VMEM_LIMIT = 48 * 1024 * 1024  # > v5e's 16 MiB default scoped, <= v7x 64 MiB physical


def _round_up(x, m):
    return (x + m - 1) // m * m


def _pick_tile(n_rows):
    """Batch tile: multiple of 8, capped at _MAX_TB, and split so that
    mid/large batches produce >=2 grid steps for the 'parallel' axis (v7x)."""
    b8 = _round_up(max(n_rows, 1), _SUBLANE)
    if b8 > _MAX_TB:
        return _MAX_TB
    if b8 >= _MIN_SPLIT:
        return _round_up(pl.cdiv(b8, 2), _SUBLANE)
    return b8


# ------------------------------ fused kernel --------------------------------


def _make_fused_kernel(n_hidden):
    """Fused: x -> [Linear(+folded BN)+ReLU] * n_hidden -> Linear(out, lane-padded)."""

    def kernel(*refs):
        x_ref = refs[0]
        o_ref = refs[-1]
        h = x_ref[...].astype(jnp.bfloat16)                  # native-dtype load, MXU cast
        idx = 1
        for _ in range(n_hidden):
            w_ref, b_ref = refs[idx], refs[idx + 1]
            idx += 2
            y = jnp.dot(h, w_ref[...], preferred_element_type=jnp.float32)  # MXU, f32 acc
            y = y + b_ref[...]                               # BN + bias pre-folded (f32)
            h = jnp.maximum(y, 0.0).astype(jnp.bfloat16)     # VPU ReLU
        wo_ref, bo_ref = refs[idx], refs[idx + 1]
        y = jnp.dot(h, wo_ref[...], preferred_element_type=jnp.float32)
        o_ref[...] = (y + bo_ref[...]).astype(o_ref.dtype)   # lane-dense bf16 store

    return kernel


def _fused_forward(x2d, layers):
    """x2d: [B, Fin] (native dtype).  layers: list of (w_bf16 [in,out], b_f32 [1,out]),
    all lane-padded; last entry is the output layer.  Returns [B, out_pad] bf16."""
    B, fin = x2d.shape
    out_pad = layers[-1][0].shape[1]

    tb = _pick_tile(B)
    grid = (pl.cdiv(B, tb),)   # ragged last tile handled by Pallas edge masking

    in_specs = [pl.BlockSpec((tb, fin), lambda i: (i, 0))]
    operands = [x2d]
    for w, b in layers:
        # Grid-invariant index_map -> weights/biases stay resident in VMEM.
        # TODO(synk): pipeline_mode=pl.Buffered(1) would drop their (tiny) second
        #             buffer; left at the default for maximal portability.
        in_specs.append(pl.BlockSpec(w.shape, lambda i: (0, 0)))
        in_specs.append(pl.BlockSpec(b.shape, lambda i: (0, 0)))
        operands.extend((w, b))

    flops = 2 * B * sum(int(w.shape[0]) * int(w.shape[1]) for w, _ in layers)
    bytes_accessed = (
        int(x2d.size) * x2d.dtype.itemsize
        + B * out_pad * 2
        + sum(int(w.size) * w.dtype.itemsize + int(b.size) * b.dtype.itemsize
              for w, b in layers))

    return pl.pallas_call(
        _make_fused_kernel(len(layers) - 1),
        out_shape=jax.ShapeDtypeStruct((B, out_pad), jnp.bfloat16),
        grid=grid,
        in_specs=in_specs,
        out_specs=pl.BlockSpec((tb, out_pad), lambda i: (i, 0)),
        compiler_params=pltpu.CompilerParams(
            dimension_semantics=("parallel",),       # shards across v7x's 2 TCs
            vmem_limit_bytes=_VMEM_LIMIT),
        cost_estimate=pl.CostEstimate(
            flops=flops, transcendentals=0, bytes_accessed=bytes_accessed),
    )(*operands)


# --------------------------- params: init & packing --------------------------


def init_fcnn_params(key, input_dim, hidden_dims=(256, 128, 64), output_dim=2):
    """PyTorch-like init: nn.Linear U[-1/sqrt(fan_in), +]; BatchNorm1d defaults
    (gamma=1, beta=0, running_mean=0, running_var=1)."""
    params = {"hidden": [], "out": None}
    prev = input_dim
    for h in hidden_dims:
        key, kw, kb = jax.random.split(key, 3)
        bound = 1.0 / jnp.sqrt(float(prev))
        w = jax.random.uniform(kw, (h, prev), jnp.float32, -bound, bound)  # [out, in]
        b = jax.random.uniform(kb, (h,), jnp.float32, -bound, bound)
        gamma = jnp.ones((h,), jnp.float32)
        beta = jnp.zeros((h,), jnp.float32)
        running_mean = jnp.zeros((h,), jnp.float32)
        running_var = jnp.ones((h,), jnp.float32)
        params["hidden"].append((w, b, gamma, beta, running_mean, running_var))
        prev = h
    key, kw, kb = jax.random.split(key, 3)
    bound = 1.0 / jnp.sqrt(float(prev))
    w = jax.random.uniform(kw, (output_dim, prev), jnp.float32, -bound, bound)
    b = jax.random.uniform(kb, (output_dim,), jnp.float32, -bound, bound)
    params["out"] = (w, b)
    return params


def pack_fcnn_params(params, eps=1e-5):
    """Fold BN (inference stats) into the weights, transpose to [in, out], cast
    weights to bf16, and lane-pad every layer's output dim (and the next layer's
    input dim) to a multiple of 128 so the whole chain is lane-dense."""
    layers = []
    prev_out_pad = None   # None -> first layer keeps the raw input feature dim
    for (w, b, gamma, beta, rm, rv) in params["hidden"]:
        out_dim, in_dim = w.shape
        scale = gamma / jnp.sqrt(rv + eps)                    # [out]
        shift = beta - rm * scale
        wt = w.T * scale[None, :]                             # [in, out] col-scaled
        bf = b * scale + shift
        out_pad = _round_up(out_dim, _LANE)
        in_p = in_dim if prev_out_pad is None else prev_out_pad
        w_p = jnp.zeros((in_p, out_pad), jnp.float32).at[:in_dim, :out_dim].set(wt)
        b_p = jnp.zeros((1, out_pad), jnp.float32).at[:, :out_dim].set(bf)
        layers.append((w_p.astype(jnp.bfloat16), b_p))
        prev_out_pad = out_pad
    w, b = params["out"]
    out_dim, in_dim = w.shape
    o_pad = _round_up(max(out_dim, _LANE), _LANE)
    in_p = in_dim if prev_out_pad is None else prev_out_pad
    w_p = jnp.zeros((in_p, o_pad), jnp.float32).at[:in_dim, :out_dim].set(w.T)
    b_p = jnp.zeros((1, o_pad), jnp.float32).at[:, :out_dim].set(b)
    layers.append((w_p.astype(jnp.bfloat16), b_p))
    return tuple(layers), out_dim


# ------------------------------- forward pass --------------------------------


@functools.partial(jax.jit, static_argnames=("output_dim",))
def fcnn_forward(x, layers, *, output_dim):
    """Equivalent of FCNNModel.forward (inference)."""
    B = x.shape[0]
    h = x.reshape(B, -1)                       # x.view(batch_size, -1); keep native dtype
    out = _fused_forward(h, list(layers))      # [B, out_pad] bf16
    return out[:, :output_dim].astype(jnp.float32)   # drop lane padding


# pure-JAX f32 reference (un-folded params) for a correctness check
def fcnn_forward_ref(x, params, eps=1e-5):
    B = x.shape[0]
    h = x.reshape(B, -1).astype(jnp.float32)
    for (w, b, gamma, beta, rm, rv) in params["hidden"]:
        y = h @ w.T + b
        y = (y - rm) * (gamma / jnp.sqrt(rv + eps)) + beta
        h = jnp.maximum(y, 0.0)
    w, b = params["out"]
    return h @ w.T + b


if __name__ == "__main__":
    key = jax.random.PRNGKey(0)
    k_x, k_p = jax.random.split(key)

    # NCHW calcium-imaging window flattened by forward(): [2, 4, 16, 16] -> 1024 features.
    x = jax.random.normal(k_x, (2, 4, 16, 16), jnp.float32)
    input_dim = 4 * 16 * 16

    params = init_fcnn_params(k_p, input_dim, hidden_dims=(256, 128, 64), output_dim=2)
    layers, output_dim = pack_fcnn_params(params)

    out = fcnn_forward(x, layers, output_dim=output_dim)
    out = jax.block_until_ready(out)

    ref = fcnn_forward_ref(x, params)
    assert out.shape == (2, 2), out.shape
    # bf16 MXU operands + bf16 output store (f32 accumulation) -> relaxed tolerance.
    assert jnp.allclose(out, ref, atol=5e-2, rtol=5e-2), "mismatch vs reference"

    print("KERNEL_OK")
</pallas_src>

<mosaic_0001>
module attributes {stable_mosaic.version = 11 : i64} {
  func.func @kernel(%arg0: i32, %arg1: memref<8x1024xf32, #tpu.memory_space<vmem>>, %arg2: memref<1024x256xbf16, #tpu.memory_space<vmem>>, %arg3: memref<1x256xf32, #tpu.memory_space<vmem>>, %arg4: memref<256x128xbf16, #tpu.memory_space<vmem>>, %arg5: memref<1x128xf32, #tpu.memory_space<vmem>>, %arg6: memref<128x128xbf16, #tpu.memory_space<vmem>>, %arg7: memref<1x128xf32, #tpu.memory_space<vmem>>, %arg8: memref<128x128xbf16, #tpu.memory_space<vmem>>, %arg9: memref<1x128xf32, #tpu.memory_space<vmem>>, %arg10: memref<8x128xbf16, #tpu.memory_space<vmem>>) attributes {dimension_semantics = [#tpu.dimension_semantics<parallel>], iteration_bounds = array<i64: 1>, scalar_prefetch = 0 : i64, scratch_operands = 0 : i64, tpu.core_type = #tpu.core_type<tc>, window_params = [{transform_indices = @transform_0, window_bounds = array<i64: 8, 1024>}, {pipeline_mode = #tpu.pipeline_mode<synchronous>, transform_indices = @transform_1, window_bounds = array<i64: 1024, 256>}, {pipeline_mode = #tpu.pipeline_mode<synchronous>, transform_indices = @transform_2, window_bounds = array<i64: 1, 256>}, {pipeline_mode = #tpu.pipeline_mode<synchronous>, transform_indices = @transform_3, window_bounds = array<i64: 256, 128>}, {pipeline_mode = #tpu.pipeline_mode<synchronous>, transform_indices = @transform_4, window_bounds = array<i64: 1, 128>}, {pipeline_mode = #tpu.pipeline_mode<synchronous>, transform_indices = @transform_5, window_bounds = array<i64: 128, 128>}, {pipeline_mode = #tpu.pipeline_mode<synchronous>, transform_indices = @transform_6, window_bounds = array<i64: 1, 128>}, {pipeline_mode = #tpu.pipeline_mode<synchronous>, transform_indices = @transform_7, window_bounds = array<i64: 128, 128>}, {pipeline_mode = #tpu.pipeline_mode<synchronous>, transform_indices = @transform_8, window_bounds = array<i64: 1, 128>}, {transform_indices = @transform_9, window_bounds = array<i64: 8, 128>}]} {
    %c0 = arith.constant 0 : index
    %c0_0 = arith.constant 0 : index
    %0 = vector.load %arg1[%c0, %c0_0] : memref<8x1024xf32, #tpu.memory_space<vmem>>, vector<8x1024xf32>
    %1 = arith.truncf %0 : vector<8x1024xf32> to vector<8x1024xbf16>
    %c0_1 = arith.constant 0 : index
    %c0_2 = arith.constant 0 : index
    %2 = vector.load %arg2[%c0_1, %c0_2] : memref<1024x256xbf16, #tpu.memory_space<vmem>>, vector<1024x256xbf16>
    %cst = arith.constant dense<0.000000e+00> : vector<8x256xf32>
    %3 = tpu.matmul %1, %2, %cst {dimension_numbers = #tpu.dot_dimension_numbers<[1], [0], [0], [1], [0, 0, 1, 1], [], []>} : vector<8x1024xbf16>, vector<1024x256xbf16>, vector<8x256xf32> -> vector<8x256xf32>
    %c0_3 = arith.constant 0 : index
    %c0_4 = arith.constant 0 : index
    %4 = vector.load %arg3[%c0_3, %c0_4] : memref<1x256xf32, #tpu.memory_space<vmem>>, vector<1x256xf32>
    %5 = vector.broadcast %4 : vector<1x256xf32> to vector<8x256xf32>
    %6 = arith.addf %3, %5 : vector<8x256xf32>
    %cst_5 = arith.constant 0.000000e+00 : f32
    %7 = vector.broadcast %cst_5 : f32 to vector<8x256xf32>
    %8 = arith.maximumf %6, %7 : vector<8x256xf32>
    %9 = arith.truncf %8 : vector<8x256xf32> to vector<8x256xbf16>
    %c0_6 = arith.constant 0 : index
    %c0_7 = arith.constant 0 : index
    %10 = vector.load %arg4[%c0_6, %c0_7] : memref<256x128xbf16, #tpu.memory_space<vmem>>, vector<256x128xbf16>
    %cst_8 = arith.constant dense<0.000000e+00> : vector<8x128xf32>
    %11 = tpu.matmul %9, %10, %cst_8 {dimension_numbers = #tpu.dot_dimension_numbers<[1], [0], [0], [1], [0, 0, 1, 1], [], []>} : vector<8x256xbf16>, vector<256x128xbf16>, vector<8x128xf32> -> vector<8x128xf32>
    %c0_9 = arith.constant 0 : index
    %c0_10 = arith.constant 0 : index
    %12 = vector.load %arg5[%c0_9, %c0_10] : memref<1x128xf32, #tpu.memory_space<vmem>>, vector<1x128xf32>
    %13 = vector.broadcast %12 : vector<1x128xf32> to vector<8x128xf32>
    %14 = arith.addf %11, %13 : vector<8x128xf32>
    %cst_11 = arith.constant 0.000000e+00 : f32
    %15 = vector.broadcast %cst_11 : f32 to vector<8x128xf32>
    %16 = arith.maximumf %14, %15 : vector<8x128xf32>
    %17 = arith.truncf %16 : vector<8x128xf32> to vector<8x128xbf16>
    %c0_12 = arith.constant 0 : index
    %c0_13 = arith.constant 0 : index
    %18 = vector.load %arg6[%c0_12, %c0_13] : memref<128x128xbf16, #tpu.memory_space<vmem>>, vector<128x128xbf16>
    %cst_14 = arith.constant dense<0.000000e+00> : vector<8x128xf32>
    %19 = tpu.matmul %17, %18, %cst_14 {dimension_numbers = #tpu.dot_dimension_numbers<[1], [0], [0], [1], [0, 0, 1, 1], [], []>} : vector<8x128xbf16>, vector<128x128xbf16>, vector<8x128xf32> -> vector<8x128xf32>
    %c0_15 = arith.constant 0 : index
    %c0_16 = arith.constant 0 : index
    %20 = vector.load %arg7[%c0_15, %c0_16] : memref<1x128xf32, #tpu.memory_space<vmem>>, vector<1x128xf32>
    %21 = vector.broadcast %20 : vector<1x128xf32> to vector<8x128xf32>
    %22 = arith.addf %19, %21 : vector<8x128xf32>
    %cst_17 = arith.constant 0.000000e+00 : f32
    %23 = vector.broadcast %cst_17 : f32 to vector<8x128xf32>
    %24 = arith.maximumf %22, %23 : vector<8x128xf32>
    %25 = arith.truncf %24 : vector<8x128xf32> to vector<8x128xbf16>
    %c0_18 = arith.constant 0 : index
    %c0_19 = arith.constant 0 : index
    %26 = vector.load %arg8[%c0_18, %c0_19] : memref<128x128xbf16, #tpu.memory_space<vmem>>, vector<128x128xbf16>
    %cst_20 = arith.constant dense<0.000000e+00> : vector<8x128xf32>
    %27 = tpu.matmul %25, %26, %cst_20 {dimension_numbers = #tpu.dot_dimension_numbers<[1], [0], [0], [1], [0, 0, 1, 1], [], []>} : vector<8x128xbf16>, vector<128x128xbf16>, vector<8x128xf32> -> vector<8x128xf32>
    %c0_21 = arith.constant 0 : index
    %c0_22 = arith.constant 0 : index
    %28 = vector.load %arg9[%c0_21, %c0_22] : memref<1x128xf32, #tpu.memory_space<vmem>>, vector<1x128xf32>
    %29 = vector.broadcast %28 : vector<1x128xf32> to vector<8x128xf32>
    %30 = arith.addf %27, %29 : vector<8x128xf32>
    %31 = arith.truncf %30 : vector<8x128xf32> to vector<8x128xbf16>
    %c0_23 = arith.constant 0 : index
    %c0_24 = arith.constant 0 : index
    %32 = vector.load %arg10[%c0_23, %c0_24] : memref<8x128xbf16, #tpu.memory_space<vmem>>, vector<8x128xbf16>
    tpu.vector_store %arg10[%c0_23, %c0_24], %31 {strides = array<i32>} : memref<8x128xbf16, #tpu.memory_space<vmem>>, vector<8x128xbf16>,
    return
  }
  func.func @transform_0(%arg0: i32) -> (i32, i32) {
    %c0_i32 = arith.constant 0 : i32
    %c0_i32_0 = arith.constant 0 : i32
    return %arg0, %c0_i32 : i32, i32
  }
  func.func @transform_1(%arg0: i32) -> (i32, i32) {
    %c0_i32 = arith.constant 0 : i32
    %c0_i32_0 = arith.constant 0 : i32
    %c0_i32_1 = arith.constant 0 : i32
    return %c0_i32, %c0_i32_0 : i32, i32
  }
  func.func @transform_2(%arg0: i32) -> (i32, i32) {
    %c0_i32 = arith.constant 0 : i32
    %c0_i32_0 = arith.constant 0 : i32
    %c0_i32_1 = arith.constant 0 : i32
    return %c0_i32, %c0_i32_0 : i32, i32
  }
  func.func @transform_3(%arg0: i32) -> (i32, i32) {
    %c0_i32 = arith.constant 0 : i32
    %c0_i32_0 = arith.constant 0 : i32
    %c0_i32_1 = arith.constant 0 : i32
    return %c0_i32, %c0_i32_0 : i32, i32
  }
  func.func @transform_4(%arg0: i32) -> (i32, i32) {
    %c0_i32 = arith.constant 0 : i32
    %c0_i32_0 = arith.constant 0 : i32
    %c0_i32_1 = arith.constant 0 : i32
    return %c0_i32, %c0_i32_0 : i32, i32
  }
  func.func @transform_5(%arg0: i32) -> (i32, i32) {
    %c0_i32 = arith.constant 0 : i32
    %c0_i32_0 = arith.constant 0 : i32
    %c0_i32_1 = arith.constant 0 : i32
    return %c0_i32, %c0_i32_0 : i32, i32
  }
  func.func @transform_6(%arg0: i32) -> (i32, i32) {
    %c0_i32 = arith.constant 0 : i32
    %c0_i32_0 = arith.constant 0 : i32
    %c0_i32_1 = arith.constant 0 : i32
    return %c0_i32, %c0_i32_0 : i32, i32
  }
  func.func @transform_7(%arg0: i32) -> (i32, i32) {
    %c0_i32 = arith.constant 0 : i32
    %c0_i32_0 = arith.constant 0 : i32
    %c0_i32_1 = arith.constant 0 : i32
    return %c0_i32, %c0_i32_0 : i32, i32
  }
  func.func @transform_8(%arg0: i32) -> (i32, i32) {
    %c0_i32 = arith.constant 0 : i32
    %c0_i32_0 = arith.constant 0 : i32
    %c0_i32_1 = arith.constant 0 : i32
    return %c0_i32, %c0_i32_0 : i32, i32
  }
  func.func @transform_9(%arg0: i32) -> (i32, i32) {
    %c0_i32 = arith.constant 0 : i32
    %c0_i32_0 = arith.constant 0 : i32
    return %arg0, %c0_i32 : i32, i32
  }
}

</mosaic_0001>

<bundles_post_ra>
// kernel: fcnn_forward.1
= control target key start
LH: loop header
LB: loop body
LE: loop exit
PB: predicated region body
PF: predicated region fallthrough
CT: control target
= control target key end

     0   :  { %14 = vsyncpa [#allocation3], 0  ;;  %s2416_s0 = inlined_call_operand.vmem [shape: f32[2,1024], index: 0, kind: input, shape index: {}]   ;;  %s2417_s1 = inlined_call_operand.hbm [shape: bf16[1024,256], index: 1, kind: input, shape index: {}]   ;;  %s2418_s2 = inlined_call_operand.vmem [shape: f32[1,256], index: 2, kind: input, shape index: {}]   ;;  %s2419_s3 = inlined_call_operand.vmem [shape: bf16[256,128], index: 3, kind: input, shape index: {}]   ;;  %s2420_s4 = inlined_call_operand.vmem [shape: f32[1,128], index: 4, kind: input, shape index: {}]   ;;  %s2421_s5 = inlined_call_operand.hbm [shape: bf16[128,128], index: 5, kind: input, shape index: {}]   ;;  %s2422_s6 = inlined_call_operand.vmem [shape: f32[1,128], index: 6, kind: input, shape index: {}]   ;;  %s2423_s7 = inlined_call_operand.hbm [shape: bf16[128,128], index: 7, kind: input, shape index: {}]   ;;  %s2424_s8 = inlined_call_operand.vmem [shape: f32[1,128], index: 8, kind: input, shape index: {}]   ;;  %s2425_s9 = inlined_call_operand.vmem [shape: bf16[2,128], index: 9, kind: output, shape index: {}]  }
   0x1   :  { %15 = vsyncpa [#allocation5], 0  ;;  %s2176_s30 = smov [#allocation4]   ;;  %s2106_s13 = scalar_lea.hbm %s2421_s5, 1024 }
   0x2   :  { %s41_s10 = sshll.u32 %s2176_s30, 4  ;;  %p2107_p0 = scmp.ne.s32.totalorder %s2421_s5, %s2106_s13  ;;  %s42_s10 = int_to_ptr.vmem [resolvable:$true] %s41_s10 }
   0x3   :  { %p2110_p1 = scmp.lt.u32.totalorder %s2106_s13, %s2421_s5 }
   0x5   :  { %p2112_p2 = pnand %p2110_p1, %p2107_p0 }
   0x7   :  { %2115 = shalt.err (!%p2112_p2)
}
   0x8   :  { %s2116_s18 = scalar_lea.vmem %s42_s10, 1024  ;;  %p2121_p4 = scmp.lt.s32.totalorder %s42_s10, %s42_s10 }
   0x9   :  { %p2117_p3 = scmp.ne.s32.totalorder %s42_s10, %s2116_s18  ;;  %p2122_p5 = scmp.lt.s32.totalorder %s2116_s18, %s2116_s18 }
   0xb   :  { %p2123_p6 = por %p2122_p5, %p2121_p4 }
   0xd   :  { %p2124_p7 = pnand %p2123_p6, %p2117_p3 }
   0xf   :  { %2127 = shalt.err (!%p2124_p7)
}
  0x10   :  { %s2177_s19 = smov 64   ;;  %s2178_s20 = smov 4  }
  0x11   :  { %47 = dma.hbm_to_vmem [thread:$0]  %s2421_s5, 1024, %s42_s10, [#allocation5], %s2177_s19, %s2177_s19, %s2178_s20  }
  0x12   :  { %s2179_s23 = smov [#allocation2]   ;;  %s2128_s27 = scalar_lea.hbm %s2417_s1, 16384 }
  0x13   :  { %s23_s24 = sshll.u32 %s2179_s23, 4  ;;  %p2129_p8 = scmp.ne.s32.totalorder %s2417_s1, %s2128_s27  ;;  %s24_s24 = int_to_ptr.vmem [resolvable:$true] %s23_s24 }
  0x14   :  { %p2132_p9 = scmp.lt.u32.totalorder %s2128_s27, %s2417_s1 }
  0x16   :  { %p2134_p10 = pnand %p2132_p9, %p2129_p8 }
  0x18   :  { %2137 = shalt.err (!%p2134_p10)
}
  0x19   :  { %s2138_s12 = scalar_lea.vmem %s24_s24, 16384  ;;  %p2143_p12 = scmp.lt.s32.totalorder %s24_s24, %s24_s24 }
  0x1a   :  { %p2139_p11 = scmp.ne.s32.totalorder %s24_s24, %s2138_s12  ;;  %p2144_p13 = scmp.lt.s32.totalorder %s2138_s12, %s2138_s12 }
  0x1c   :  { %p2145_p0 = por %p2144_p13, %p2143_p12 }
  0x1e   :  { %p2146_p1 = pnand %p2145_p0, %p2139_p11 }
  0x20   :  { %2149 = shalt.err (!%p2146_p1)
}
  0x21   :  { %s2180_s5 = smov 128   ;;  %s2181_s10 = smov 8  }
  0x22   :  { %29 = dma.hbm_to_vmem [thread:$0]  %s2417_s1, 16384, %s24_s24, [#allocation3], %s2180_s5, %s2180_s5, %s2181_s10  }
  0x23   :  { %s2182_s15 = smov [#allocation6]   ;;  %s2150_s21 = scalar_lea.hbm %s2423_s7, 1024 }
  0x24   :  { %s55_s16 = sshll.u32 %s2182_s15, 4  ;;  %p2151_p2 = scmp.ne.s32.totalorder %s2423_s7, %s2150_s21  ;;  %s56_s16 = int_to_ptr.vmem [resolvable:$true] %s55_s16 }
  0x25   :  { %p2154_p3 = scmp.lt.u32.totalorder %s2150_s21, %s2423_s7 }
  0x27   :  { %p2156_p4 = pnand %p2154_p3, %p2151_p2 }
  0x29   :  { %2159 = shalt.err (!%p2156_p4)
}
  0x2a   :  { %s2160_s27 = scalar_lea.vmem %s56_s16, 1024  ;;  %p2165_p6 = scmp.lt.s32.totalorder %s56_s16, %s56_s16 }
  0x2b   :  { %p2161_p5 = scmp.ne.s32.totalorder %s56_s16, %s2160_s27  ;;  %p2166_p7 = scmp.lt.s32.totalorder %s2160_s27, %s2160_s27 }
  0x2d   :  { %p2167_p8 = por %p2166_p7, %p2165_p6 }
  0x2f   :  { %p2168_p9 = pnand %p2167_p8, %p2161_p5 }
  0x31   :  { %2171 = shalt.err (!%p2168_p9)
}
  0x32   :  { %61 = dma.hbm_to_vmem [thread:$0]  %s2423_s7, 1024, %s56_s16, [#allocation5], %s2177_s19, %s2177_s19, %s2178_s20  }
  0x33   :  { %2172 = dma.done.wait [#allocation3], 16384  }
  0x34   :  { %2173 = vsyncadd [#allocation3], 4294950912 }
  0x35   :  { %2174 = dma.done.wait [#allocation5], 2048  }
  0x36   :  { %2175 = vsyncadd [#allocation5], 4294965248  ;;  %v1870_v0 = vld [vmem:[#allocation2 + $0x104] ss:$8 sps:$4 sm:$0xff]   ;;  %v1872_v1 = vld [vmem:[#allocation2 + $0x100] ss:$8 sps:$4 sm:$0xff]   ;;  %v97_v11 = vlaneseq }
  0x37   :  { %999 = vmatprep.subr.bf16.mxu0 %v1870_v0  ;;  %v1873_v2 = vld [vmem:[#allocation2 + $0x114] ss:$8 sps:$4 sm:$0xff]   ;;  %v1875_v3 = vld [vmem:[#allocation2 + $0x110] ss:$8 sps:$4 sm:$0xff]   ;;  %v1876_v4 = vld [vmem:[#allocation2 + $0x124] ss:$8 sps:$4 sm:$0xff]  }
  0x38   :  { %1000 = vmatpush1.bf16.msra.mxu0 %v1872_v1  ;;  %v1878_v5 = vld [vmem:[#allocation2 + $0x120] ss:$8 sps:$4 sm:$0xff]   ;;  %v1879_v6 = vld [vmem:[#allocation2 + $0x134] ss:$8 sps:$4 sm:$0xff]   ;;  %v1881_v7 = vld [vmem:[#allocation2 + $0x130] ss:$8 sps:$4 sm:$0xff]  }
  0x39   :  { %1001 = vmatprep.subr.bf16.mxu0 %v1873_v2  ;;  %v1882_v8 = vld [vmem:[#allocation2 + $0x144] ss:$8 sps:$4 sm:$0xff]   ;;  %v2183_v9 = vmov 1983009808   ;;  %v1884_v12 = vld [vmem:[#allocation2 + $0x140] ss:$8 sps:$4 sm:$0xff]  }
  0x3a   :  { %v95_v10 = vunpack.c.l.s4 %v2183_v9  ;;  %v1885_v13 = vld [vmem:[#allocation2 + $0x154] ss:$8 sps:$4 sm:$0xff]   ;;  %v2279_v15 = vshrl.u32 %v97_v11, 7  ;;  %v1887_v16 = vld [vmem:[#allocation2 + $0x150] ss:$8 sps:$4 sm:$0xff]   ;;  %vm2185_vm0 = vmmov 0  }
  0x3b   :  { %v1888_v17 = vld [vmem:[#allocation2 + $0x164] ss:$8 sps:$4 sm:$0xff]   ;;  %v1890_v19 = vld [vmem:[#allocation2 + $0x160] ss:$8 sps:$4 sm:$0xff]   ;;  %v1891_v22 = vld [vmem:[#allocation2 + $0x174] ss:$8 sps:$4 sm:$0xff]  }
  0x3c   :  { %1002 = vmatpush1.bf16.msra.mxu0 %v1875_v3  ;;  %v96_v14 = vunpack.c.0.s8 %v95_v10  ;;  %v1918_v20 = vld [vmem:[%s2416_s0 + $0x4] ss:$16 sps:$4 sm:$0xff]   ;;  %v1893_v25 = vld [vmem:[#allocation2 + $0x170] ss:$8 sps:$4 sm:$0xff]   ;;  %v1896_v29 = vld [vmem:[#allocation2 + $0x180] ss:$8 sps:$4 sm:$0xff]  }
  0x3d   :  { %1003 = vmatprep.subr.bf16.mxu0 %v1876_v4  ;;  %v1920_v21 = vld [vmem:[%s2416_s0 + $0x24] ss:$16 sps:$4 sm:$0xff]   ;;  %v1899_v31 = vld [vmem:[#allocation2 + $0x190] ss:$8 sps:$4 sm:$0xff]   ;;  %v1902_v33 = vld [vmem:[#allocation2 + $0x1a0] ss:$8 sps:$4 sm:$0xff]  }
  0x3e   :  { %v2282_v18 = vsub.s32 %v96_v14, %v2279_v15  ;;  %v1894_v27 = vld [vmem:[#allocation2 + $0x184] ss:$8 sps:$4 sm:$0xff]   ;;  %v1897_v30 = vld [vmem:[#allocation2 + $0x194] ss:$8 sps:$4 sm:$0xff]   ;;  %v1905_v35 = vld [vmem:[#allocation2 + $0x1b0] ss:$8 sps:$4 sm:$0xff]  }
  0x3f   :  { %v1900_v32 = vld [vmem:[#allocation2 + $0x1a4] ss:$8 sps:$4 sm:$0xff]   ;;  %v1903_v34 = vld [vmem:[#allocation2 + $0x1b4] ss:$8 sps:$4 sm:$0xff]   ;;  %v1969_v38 = vld [vmem:[#allocation2] ss:$8 sps:$4 sm:$0xff]  }
  0x40   :  { %1004 = vmatpush1.bf16.msra.mxu0 %v1878_v5  ;;  %v107_v23 = vrot.slane %v1918_v20, %v2282_v18  ;;  %v121_v24 = vrot.slane %v1920_v21, %v2282_v18  ;;  %v1906_v36 = vld [vmem:[#allocation2 + $0x1c4] ss:$8 sps:$4 sm:$0xff]   ;;  %v1908_v39 = vld [vmem:[#allocation2 + $0x1c0] ss:$8 sps:$4 sm:$0xff]   ;;  %v1909_v40 = vld [vmem:[#allocation2 + $0x1d4] ss:$8 sps:$4 sm:$0xff]  }
  0x41   :  { %1005 = vmatprep.subr.bf16.mxu0 %v1879_v6  ;;  %v1967_v37 = vld [vmem:[#allocation2 + $0x4] ss:$8 sps:$4 sm:$0xff]   ;;  %v1973_v41 = vld [vmem:[#allocation2 + $0x14] ss:$8 sps:$4 sm:$0xff]   ;;  %v1975_v42 = vld [vmem:[#allocation2 + $0x10] ss:$8 sps:$4 sm:$0xff]  }
  0x42   :  { %v125_v26 = vcombine.high %v107_v23, %v121_v24  ;;  %958 = vmatprep.subr.bf16.mxu1 %v1967_v37  ;;  %v1976_v43 = vld [vmem:[%s2416_s0 + $0x8] ss:$16 sps:$4 sm:$0xff]   ;;  %v1983_v48 = vld [vmem:[#allocation2 + $0x24] ss:$8 sps:$4 sm:$0xff]   ;;  %v1989_v53 = vld [vmem:[#allocation2 + $0x34] ss:$8 sps:$4 sm:$0xff]   ;;  %v124_v58 = vcombine.low %v107_v23, %v121_v24 }
  0x43   :  { %959 = vmatpush1.bf16.msra.mxu1 %v1969_v38  ;;  %v1978_v44 = vld [vmem:[%s2416_s0 + $0x28] ss:$16 sps:$4 sm:$0xff]   ;;  %v136_v46 = vrot.slane %v1976_v43, %v2282_v18  ;;  %v1912_v50 = vld [vmem:[#allocation2 + $0x1e4] ss:$8 sps:$4 sm:$0xff]   ;;  %v1915_v54 = vld [vmem:[#allocation2 + $0x1f4] ss:$8 sps:$4 sm:$0xff]  }
  0x44   :  { %1006 = vmatpush1.bf16.msra.mxu0 %v1881_v7  ;;  %v173_v28 = vpack.c.bf16 %v125_v26, %v125_v26  ;;  %960 = vmatprep.subr.bf16.mxu1 %v1973_v41  ;;  %v1911_v45 = vld [vmem:[#allocation2 + $0x1d0] ss:$8 sps:$4 sm:$0xff]   ;;  %v150_v47 = vrot.slane %v1978_v44, %v2282_v18  ;;  %v1985_v49 = vld [vmem:[#allocation2 + $0x20] ss:$8 sps:$4 sm:$0xff]   ;;  %v1995_v56 = vld [vmem:[#allocation2 + $0x44] ss:$8 sps:$4 sm:$0xff]   ;;  %v172_v63 = vpack.c.bf16 %v124_v58, %v124_v58 }
  0x45   :  { %1007 = vmatprep.subr.bf16.mxu0 %v1882_v8  ;;  %v1914_v52 = vld [vmem:[#allocation2 + $0x1e0] ss:$8 sps:$4 sm:$0xff]   ;;  %v1991_v55 = vld [vmem:[#allocation2 + $0x30] ss:$8 sps:$4 sm:$0xff]   ;;  %v1924_v59 = vld [vmem:[#allocation2 + $0x204] ss:$8 sps:$4 sm:$0xff]  }
  0x46   :  { %1031 = vmatprep.mubr.bf16.mxu0 %v173_v28  ;;  %v2300_v51 = vcombine.low %v136_v46, %v150_v47  ;;  %v1917_v57 = vld [vmem:[#allocation2 + $0x1f0] ss:$8 sps:$4 sm:$0xff]   ;;  %v159_v60 = vcombine.high %v136_v46, %v150_v47  ;;  %v1997_v61 = vld [vmem:[#allocation2 + $0x40] ss:$8 sps:$4 sm:$0xff]   ;;  %v2001_v62 = vld [vmem:[#allocation2 + $0x54] ss:$8 sps:$4 sm:$0xff]  }
  0x47   :  { %961 = vmatpush1.bf16.msra.mxu1 %v1975_v42  ;;  %v1922_v0 = vld [vmem:[#allocation2 + $0x200] ss:$8 sps:$4 sm:$0xff]   ;;  %v1927_v1 = vld [vmem:[#allocation2 + $0x214] ss:$8 sps:$4 sm:$0xff]   ;;  %v2003_v3 = vld [vmem:[#allocation2 + $0x50] ss:$8 sps:$4 sm:$0xff]  }
  0x48   :  { %1008 = vmatpush1.bf16.msra.mxu0 %v1884_v12  ;;  %962 = vmatprep.subr.bf16.mxu1 %v1983_v48  ;;  %v175_v2 = vpack.c.bf16 %v159_v60, %v159_v60  ;;  %v2007_v4 = vld [vmem:[#allocation2 + $0x64] ss:$8 sps:$4 sm:$0xff]   ;;  %v1925_v5 = vld [vmem:[#allocation2 + $0x210] ss:$8 sps:$4 sm:$0xff]   ;;  %v2009_v7 = vld [vmem:[#allocation2 + $0x60] ss:$8 sps:$4 sm:$0xff]  }
  0x49   :  { %1009 = vmatprep.subr.bf16.mxu0 %v1885_v13  ;;  %v1930_v6 = vld [vmem:[#allocation2 + $0x224] ss:$8 sps:$4 sm:$0xff]   ;;  %v2013_v8 = vld [vmem:[#allocation2 + $0x74] ss:$8 sps:$4 sm:$0xff]   ;;  %v1928_v9 = vld [vmem:[#allocation2 + $0x220] ss:$8 sps:$4 sm:$0xff]  }
  0x4a   :  { %v1933_v10 = vld [vmem:[#allocation2 + $0x234] ss:$8 sps:$4 sm:$0xff]   ;;  %v2015_v11 = vld [vmem:[#allocation2 + $0x70] ss:$8 sps:$4 sm:$0xff]   ;;  %v2019_v12 = vld [vmem:[#allocation2 + $0x84] ss:$8 sps:$4 sm:$0xff]  }
  0x4b   :  { %963 = vmatpush1.bf16.msra.mxu1 %v1985_v49  ;;  %v1931_v13 = vld [vmem:[#allocation2 + $0x230] ss:$8 sps:$4 sm:$0xff]   ;;  %v1936_v14 = vld [vmem:[#allocation2 + $0x244] ss:$8 sps:$4 sm:$0xff]   ;;  %v1939_v20 = vld [vmem:[#allocation2 + $0x254] ss:$8 sps:$4 sm:$0xff]  }
  0x4c   :  { %1010 = vmatpush1.bf16.msra.mxu0 %v1887_v16  ;;  %964 = vmatprep.subr.bf16.mxu1 %v1989_v53  ;;  %v2021_v16 = vld [vmem:[#allocation2 + $0x80] ss:$8 sps:$4 sm:$0xff]   ;;  %v2027_v21 = vld [vmem:[#allocation2 + $0x90] ss:$8 sps:$4 sm:$0xff]   ;;  %v1942_v24 = vld [vmem:[#allocation2 + $0x264] ss:$8 sps:$4 sm:$0xff]  }
  0x4d   :  { %1011 = vmatprep.subr.bf16.mxu0 %v1888_v17  ;;  %v2025_v17 = vld [vmem:[#allocation2 + $0x94] ss:$8 sps:$4 sm:$0xff]   ;;  %v1937_v23 = vld [vmem:[#allocation2 + $0x250] ss:$8 sps:$4 sm:$0xff]   ;;  %v1948_v38 = vld [vmem:[#allocation2 + $0x284] ss:$8 sps:$4 sm:$0xff]  }
  0x4e   :  { %v2037_v26 = vld [vmem:[#allocation2 + $0xb4] ss:$8 sps:$4 sm:$0xff]   ;;  %v1946_v44 = vld [vmem:[#allocation2 + $0x280] ss:$8 sps:$4 sm:$0xff]   ;;  %v2051_v48 = vld [vmem:[#allocation2 + $0xd0] ss:$8 sps:$4 sm:$0xff]  }
  0x4f   :  { %965 = vmatpush1.bf16.msra.mxu1 %v1991_v55  ;;  %v1945_v28 = vld [vmem:[#allocation2 + $0x274] ss:$8 sps:$4 sm:$0xff]   ;;  %v2055_v49 = vld [vmem:[#allocation2 + $0xe4] ss:$8 sps:$4 sm:$0xff]  }
  0x50   :  { %1012 = vmatpush1.bf16.msra.mxu0 %v1890_v19  ;;  %966 = vmatprep.subr.bf16.mxu1 %v1995_v56  ;;  %v1934_v19 = vld [vmem:[#allocation2 + $0x240] ss:$8 sps:$4 sm:$0xff]   ;;  %v2073_v37 = vld [vmem:[%s2416_s0 + $0x2c] ss:$16 sps:$4 sm:$0xff]   ;;  %v2063_v56 = vld [vmem:[#allocation2 + $0xf0] ss:$8 sps:$4 sm:$0xff]  }
  0x51   :  { %1013 = vmatprep.subr.bf16.mxu0 %v1891_v22  ;;  %v2031_v22 = vld [vmem:[#allocation2 + $0xa4] ss:$8 sps:$4 sm:$0xff]   ;;  %v2049_v42 = vld [vmem:[#allocation2 + $0xd4] ss:$8 sps:$4 sm:$0xff]   ;;  %v2320_v43 = vrot.slane %v2073_v37, %v2282_v18  ;;  %v2034_v37 = vld [vmem:[#allocation2 + $0x390] ss:$8 sps:$4 sm:$0xff]  }
  0x52   :  { %v1951_v46 = vld [vmem:[#allocation2 + $0x294] ss:$8 sps:$4 sm:$0xff]   ;;  %v2074_v58 = vld [vmem:[%s2419_s3 + $0x40] sm:$0xff]  }
  0x53   :  { %967 = vmatpush1.bf16.msra.mxu1 %v1997_v61  ;;  %v2061_v53 = vld [vmem:[#allocation2 + $0xf4] ss:$8 sps:$4 sm:$0xff]   ;;  %v1960_v60 = vld [vmem:[#allocation2 + $0x2c4] ss:$8 sps:$4 sm:$0xff]  }
  0x54   :  { %1014 = vmatpush1.bf16.msra.mxu0 %v1893_v25  ;;  %968 = vmatprep.subr.bf16.mxu1 %v2001_v62  ;;  %v2033_v25 = vld [vmem:[#allocation2 + $0xa0] ss:$8 sps:$4 sm:$0xff]   ;;  %v1957_v55 = vld [vmem:[#allocation2 + $0x2b4] ss:$8 sps:$4 sm:$0xff]  }
  0x55   :  { %1015 = vmatprep.subr.bf16.mxu0 %v1894_v27  ;;  %v1940_v27 = vld [vmem:[#allocation2 + $0x260] ss:$8 sps:$4 sm:$0xff]  }
  0x56   :  { %v2075_v61 = vld [vmem:[%s2419_s3] sm:$0xff]  }
  0x57   :  { %969 = vmatpush1.bf16.msra.mxu1 %v2003_v3  ;;  %v2078_v3 = vld [vmem:[%s2419_s3 + $0x50] sm:$0xff]  }
  0x58   :  { %1016 = vmatpush1.bf16.msra.mxu0 %v1896_v29  ;;  %970 = vmatprep.subr.bf16.mxu1 %v2007_v4  ;;  %v2039_v29 = vld [vmem:[#allocation2 + $0xb0] ss:$8 sps:$4 sm:$0xff]  }
  0x59   :  { %1017 = vmatprep.subr.bf16.mxu0 %v1897_v30  ;;  %v2067_v30 = vld [vmem:[%s2416_s0] ss:$16 sps:$4 sm:$0xff]  }
  0x5a   :  { %v1961_v4 = vld [vmem:[#allocation2 + $0x2d0] ss:$8 sps:$4 sm:$0xff]  }
  0x5b   :  { %971 = vmatpush1.bf16.msra.mxu1 %v2009_v7  ;;  %v2080_v7 = vld [vmem:[%s2419_s3 + $0x58] sm:$0xff]  }
  0x5c   :  { %1018 = vmatpush1.bf16.msra.mxu0 %v1899_v31  ;;  %972 = vmatprep.subr.bf16.mxu1 %v2013_v8  ;;  %v2068_v31 = vld [vmem:[%s2416_s0 + $0x20] ss:$16 sps:$4 sm:$0xff]  }
  0x5d   :  { %1019 = vmatprep.subr.bf16.mxu0 %v1900_v32  ;;  %v1943_v32 = vld [vmem:[#allocation2 + $0x270] ss:$8 sps:$4 sm:$0xff]   ;;  %v1964_v8 = vld [vmem:[#allocation2 + $0x2e0] ss:$8 sps:$4 sm:$0xff]  }
  0x5f   :  { %973 = vmatpush1.bf16.msra.mxu1 %v2015_v11  ;;  %v2082_v11 = vld [vmem:[%s2419_s3 + $0x60] sm:$0xff]  }
  0x60   :  { %1020 = vmatpush1.bf16.msra.mxu0 %v1902_v33  ;;  %974 = vmatprep.subr.bf16.mxu1 %v2019_v12  ;;  %v2043_v33 = vld [vmem:[#allocation2 + $0xc4] ss:$8 sps:$4 sm:$0xff]   ;;  %v1970_v12 = vld [vmem:[#allocation2 + $0x2f0] ss:$8 sps:$4 sm:$0xff]  }
  0x61   :  { %1021 = vmatprep.subr.bf16.mxu0 %v1903_v34  ;;  %v100_v34 = vrot.slane %v2067_v30, %v2282_v18  ;;  %v2018_v30 = vld [vmem:[#allocation2 + $0x364] ss:$8 sps:$4 sm:$0xff]  }
  0x63   :  { %975 = vmatpush1.bf16.msra.mxu1 %v2021_v16  ;;  %v2083_v16 = vld [vmem:[%s2419_s3 + $0x20] sm:$0xff]  }
  0x64   :  { %1022 = vmatpush1.bf16.msra.mxu0 %v1905_v35  ;;  %976 = vmatprep.subr.bf16.mxu1 %v2025_v17  ;;  %v114_v35 = vrot.slane %v2068_v31, %v2282_v18  ;;  %v174_v17 = vpack.c.bf16 %v2300_v51, %v2300_v51  ;;  %v2006_v51 = vld [vmem:[#allocation2 + $0x344] ss:$8 sps:$4 sm:$0xff]   ;;  %v2016_v31 = vld [vmem:[#allocation2 + $0x360] ss:$8 sps:$4 sm:$0xff]  }
  0x65   :  { %1023 = vmatprep.subr.bf16.mxu0 %v1906_v36  ;;  %v2072_v36 = vld [vmem:[%s2416_s0 + $0xc] ss:$16 sps:$4 sm:$0xff]  }
  0x66   :  { %v2317_v41 = vrot.slane %v2072_v36, %v2282_v18  ;;  %v2057_v18 = vld [vmem:[#allocation2 + $0xe0] ss:$8 sps:$4 sm:$0xff]   ;;  %v2036_v36 = vld [vmem:[#allocation2 + $0x394] ss:$8 sps:$4 sm:$0xff]  }
  0x67   :  { %977 = vmatpush1.bf16.msra.mxu1 %v2027_v21  ;;  %v1988_v21 = vld [vmem:[#allocation2 + $0x314] ss:$8 sps:$4 sm:$0xff]  }
  0x68   :  { %1024 = vmatpush1.bf16.msra.mxu0 %v1908_v39  ;;  %978 = vmatprep.subr.bf16.mxu1 %v2031_v22  ;;  %v2045_v39 = vld [vmem:[#allocation2 + $0xc0] ss:$8 sps:$4 sm:$0xff]   ;;  %v2324_v47 = vcombine.low %v2317_v41, %v2320_v43  ;;  %v1986_v22 = vld [vmem:[#allocation2 + $0x310] ss:$8 sps:$4 sm:$0xff]  }
  0x69   :  { %1025 = vmatprep.subr.bf16.mxu0 %v1909_v40  ;;  %v123_v40 = vcombine.high %v100_v34, %v114_v35 }
  0x6b   :  { %979 = vmatpush1.bf16.msra.mxu1 %v2033_v25  ;;  %v2000_v25 = vld [vmem:[#allocation2 + $0x334] ss:$8 sps:$4 sm:$0xff]  }
  0x6c   :  { %1026 = vmatpush1.bf16.msra.mxu0 %v1911_v45  ;;  %980 = vmatprep.subr.bf16.mxu1 %v2037_v26  ;;  %v171_v45 = vpack.c.bf16 %v123_v40, %v123_v40  ;;  %v1998_v26 = vld [vmem:[#allocation2 + $0x330] ss:$8 sps:$4 sm:$0xff]   ;;  %v2048_v40 = vld [vmem:[#allocation2 + $0x3b4] ss:$8 sps:$4 sm:$0xff]  }
  0x6d   :  { %1027 = vmatprep.subr.bf16.mxu0 %v1912_v50  ;;  %v1949_v50 = vld [vmem:[#allocation2 + $0x290] ss:$8 sps:$4 sm:$0xff]  }
  0x6e   :  { %990 = vmatprep.mubr.bf16.mxu1 %v171_v45  ;;  %v2058_v45 = vld [vmem:[#allocation2 + $0x3d0] ss:$8 sps:$4 sm:$0xff]  }
  0x6f   :  { %981 = vmatpush1.bf16.msra.mxu1 %v2039_v29  ;;  %v2010_v29 = vld [vmem:[#allocation2 + $0x350] ss:$8 sps:$4 sm:$0xff]  }
  0x70   :  { %1028 = vmatpush1.bf16.msra.mxu0 %v1914_v52  ;;  %982 = vmatprep.subr.bf16.mxu1 %v2043_v33  ;;  %v1954_v52 = vld [vmem:[#allocation2 + $0x2a4] ss:$8 sps:$4 sm:$0xff]   ;;  %v2022_v33 = vld [vmem:[#allocation2 + $0x370] ss:$8 sps:$4 sm:$0xff]  }
  0x71   :  { %1029 = vmatprep.subr.bf16.mxu0 %v1915_v54  ;;  %v1952_v54 = vld [vmem:[#allocation2 + $0x2a0] ss:$8 sps:$4 sm:$0xff]  }
  0x73   :  { %983 = vmatpush1.bf16.msra.mxu1 %v2045_v39  ;;  %v2040_v39 = vld [vmem:[#allocation2 + $0x3a0] ss:$8 sps:$4 sm:$0xff]  }
  0x74   :  { %1030 = vmatpush1.bf16.msra.mxu0 %v1917_v57  ;;  %984 = vmatprep.subr.bf16.mxu1 %v2049_v42  ;;  %v122_v57 = vcombine.low %v100_v34, %v114_v35  ;;  %v2030_v34 = vld [vmem:[#allocation2 + $0x384] ss:$8 sps:$4 sm:$0xff]   ;;  %v2028_v35 = vld [vmem:[#allocation2 + $0x380] ss:$8 sps:$4 sm:$0xff]  }
  0x75   :  { %1040 = vmatprep.subr.bf16.mxu0 %v1924_v59  ;;  %v1955_v59 = vld [vmem:[#allocation2 + $0x2b0] ss:$8 sps:$4 sm:$0xff]   ;;  %v2054_v42 = vld [vmem:[#allocation2 + $0x3c4] ss:$8 sps:$4 sm:$0xff]  }
  0x76   :  { %v170_v62 = vpack.c.bf16 %v122_v57, %v122_v57  ;;  %v2184_v57 = vmov 0.0  }
  0x77   :  { %1032 = vmatmul.mubr.bf16.vlgmr.msra.gmra.mrb[0].mxu0 %v172_v63  ;;  %985 = vmatpush1.bf16.msra.mxu1 %v2051_v48  ;;  %v2076_v63 = vld [vmem:[%s2419_s3 + $0x48] sm:$0xff]  }
  0x78   :  { %1041 = vmatpush1.bf16.msra.mxu0 %v1922_v0  ;;  %1072 = vmatprep.mubr.bf16.mxu0 %v175_v2  ;;  %v1958_v0 = vld [vmem:[#allocation2 + $0x2c0] ss:$8 sps:$4 sm:$0xff]  }
  0x79   :  { %1042 = vmatprep.subr.bf16.mxu0 %v1927_v1  ;;  %986 = vmatprep.subr.bf16.mxu1 %v2055_v49  ;;  %v1963_v1 = vld [vmem:[#allocation2 + $0x2d4] ss:$8 sps:$4 sm:$0xff]   ;;  %v2077_v2 = vld [vmem:[%s2419_s3 + $0x8] sm:$0xff]  }
  0x7a   :  { %v2064_v48 = vld [vmem:[#allocation2 + $0x3e0] ss:$8 sps:$4 sm:$0xff]   ;;  %v2071_v49 = vld [vmem:[#allocation2 + $0x3f4] ss:$8 sps:$4 sm:$0xff]  }
  0x7b   :  { %987 = vmatpush1.bf16.msra.mxu1 %v2057_v18  ;;  %v2084_v18 = vld [vmem:[%s2419_s3 + $0x68] sm:$0xff]  }
  0x7c   :  { %1043 = vmatpush1.bf16.msra.mxu0 %v1925_v5  ;;  %988 = vmatprep.subr.bf16.mxu1 %v2061_v53  ;;  %v1966_v5 = vld [vmem:[#allocation2 + $0x2e4] ss:$8 sps:$4 sm:$0xff]  }
  0x7d   :  { %1044 = vmatprep.subr.bf16.mxu0 %v1930_v6  ;;  %v2079_v6 = vld [vmem:[%s2419_s3 + $0x10] sm:$0xff]   ;;  %v2085_v53 = vld [vmem:[%s2419_s3 + $0x28] sm:$0xff]  }
  0x7f   :  { %989 = vmatpush1.bf16.msra.mxu1 %v2063_v56  ;;  %v2089_v56 = vld [vmem:[%s2419_s3 + $0x38] sm:$0xff]  }
  0x80   :  { %1045 = vmatpush1.bf16.msra.mxu0 %v1928_v9  ;;  %1767 = vmatprep.subr.bf16.mxu1 %v2074_v58  ;;  %v1972_v9 = vld [vmem:[#allocation2 + $0x2f4] ss:$8 sps:$4 sm:$0xff]  }
  0x81   :  { %1046 = vmatprep.subr.bf16.mxu0 %v1933_v10  ;;  %v2081_v10 = vld [vmem:[%s2419_s3 + $0x18] sm:$0xff]  }
  0x82   :  { %991 = vmatmul.mubr.bf16.vlgmr.msra.gmra.mrb[0].mxu1 %v170_v62  ;;  %v310_v62 = vsub.s32 0, %v2279_v15 }
  0x83   :  { %1768 = vmatpush3.bf16.msra.mxu1 %v2075_v61 }
  0x84   :  { %1047 = vmatpush1.bf16.msra.mxu0 %v1931_v13  ;;  %1769 = vmatprep.subr.bf16.mxu1 %v2076_v63  ;;  %v161_v13 = vcombine.high %v2317_v41, %v2320_v43  ;;  %v2046_v41 = vld [vmem:[#allocation2 + $0x3b0] ss:$8 sps:$4 sm:$0xff]   ;;  %v2052_v43 = vld [vmem:[#allocation2 + $0x3c0] ss:$8 sps:$4 sm:$0xff]  }
  0x85   :  { %1048 = vmatprep.subr.bf16.mxu0 %v1936_v14  ;;  %v1982_v14 = vld [vmem:[#allocation2 + $0x304] ss:$8 sps:$4 sm:$0xff]   ;;  %v306_v63 = vld [vmem:[%s2418_s2] sm:$0x3] }
  0x87   :  { %1770 = vmatpush3.bf16.msra.mxu1 %v2077_v2 }
  0x88   :  { %1049 = vmatpush1.bf16.msra.mxu0 %v1934_v19  ;;  %1771 = vmatprep.subr.bf16.mxu1 %v2078_v3  ;;  %v1980_v19 = vld [vmem:[#allocation2 + $0x300] ss:$8 sps:$4 sm:$0xff]  }
  0x89   :  { %1050 = vmatprep.subr.bf16.mxu0 %v1939_v20  ;;  %v177_v20 = vpack.c.bf16 %v161_v13, %v161_v13 }
  0x8b   :  { %1772 = vmatpush3.bf16.msra.mxu1 %v2079_v6 }
  0x8c   :  { %1051 = vmatpush1.bf16.msra.mxu0 %v1937_v23  ;;  %1773 = vmatprep.subr.bf16.mxu1 %v2080_v7  ;;  %v1994_v23 = vld [vmem:[#allocation2 + $0x324] ss:$8 sps:$4 sm:$0xff]  }
  0x8d   :  { %1052 = vmatprep.subr.bf16.mxu0 %v1942_v24  ;;  %v1992_v24 = vld [vmem:[#allocation2 + $0x320] ss:$8 sps:$4 sm:$0xff]  }
  0x8f   :  { %1774 = vmatpush3.bf16.msra.mxu1 %v2081_v10 }
  0x90   :  { %1053 = vmatpush1.bf16.msra.mxu0 %v1940_v27  ;;  %1775 = vmatprep.subr.bf16.mxu1 %v2082_v11  ;;  %v2004_v27 = vld [vmem:[#allocation2 + $0x340] ss:$8 sps:$4 sm:$0xff]  }
  0x91   :  { %1054 = vmatprep.subr.bf16.mxu0 %v1945_v28  ;;  %v2012_v28 = vld [vmem:[#allocation2 + $0x354] ss:$8 sps:$4 sm:$0xff]  }
  0x93   :  { %1776 = vmatpush3.bf16.msra.mxu1 %v2083_v16 }
  0x94   :  { %1055 = vmatpush1.bf16.msra.mxu0 %v1943_v32  ;;  %v2024_v32 = vld [vmem:[#allocation2 + $0x374] ss:$8 sps:$4 sm:$0xff]   ;;  %1777 = vmatprep.subr.bf16.mxu1 %v2084_v18 }
  0x95   :  { %1056 = vmatprep.subr.bf16.mxu0 %v1948_v38  ;;  %v2042_v38 = vld [vmem:[#allocation2 + $0x3a4] ss:$8 sps:$4 sm:$0xff]  }
  0x97   :  { %1778 = vmatpush3.bf16.msra.mxu1 %v2085_v53  ;;  %v1756_v53 = vld [vmem:[%s2424_s8] ss:$0 sm:$0xff] }
  0x98   :  { %1057 = vmatpush1.bf16.msra.mxu0 %v1946_v44  ;;  %v2060_v44 = vld [vmem:[#allocation2 + $0x3d4] ss:$8 sps:$4 sm:$0xff]  }
  0x99   :  { %1058 = vmatprep.subr.bf16.mxu0 %v1951_v46  ;;  %v2066_v46 = vld [vmem:[#allocation2 + $0x3e4] ss:$8 sps:$4 sm:$0xff]  }
  0x9c   :  { %1059 = vmatpush1.bf16.msra.mxu0 %v1949_v50  ;;  %v2069_v50 = vld [vmem:[#allocation2 + $0x3f0] ss:$8 sps:$4 sm:$0xff]  }
  0x9d   :  { %1060 = vmatprep.subr.bf16.mxu0 %v1954_v52  ;;  %v176_v52 = vpack.c.bf16 %v2324_v47, %v2324_v47  ;;  %v2087_v47 = vld [vmem:[%s2419_s3 + $0x30] sm:$0xff]  }
  0xa0   :  { %1061 = vmatpush1.bf16.msra.mxu0 %v1952_v54  ;;  %v2086_v54 = vld [vmem:[%s2419_s3 + $0x70] sm:$0xff]  }
  0xa1   :  { %1062 = vmatprep.subr.bf16.mxu0 %v1957_v55  ;;  %1779 = vmatprep.subr.bf16.mxu1 %v2086_v54  ;;  %v2088_v55 = vld [vmem:[%s2419_s3 + $0x78] sm:$0xff]  }
  0xa2   :  { %1780 = vmatpush3.bf16.msra.mxu1 %v2087_v47 }
  0xa3   :  { %1781 = vmatprep.subr.bf16.mxu1 %v2088_v55 }
  0xa4   :  { %1063 = vmatpush1.bf16.msra.mxu0 %v1955_v59 }
  0xa5   :  { %1064 = vmatprep.subr.bf16.mxu0 %v1960_v60 }
  0xa6   :  { %1782 = vmatpush3.bf16.msra.mxu1 %v2089_v56 }
  0xa7   :  { %1807 = vmatprep.subr.bf16.mxu1 %v2184_v57 }
  0xa8   :  { %1065 = vmatpush1.bf16.msra.mxu0 %v1958_v0  ;;  %v314_v0 = vsub.s32 1, %v2279_v15 }
  0xa9   :  { %1066 = vmatprep.subr.bf16.mxu0 %v1963_v1  ;;  %v311_v1 = vrot.slane %v306_v63, %v310_v62 }
  0xaa   :  { %v315_v2 = vrot.slane %v306_v63, %v314_v0 }
  0xac   :  { %1067 = vmatpush1.bf16.msra.mxu0 %v1961_v4 }
  0xad   :  { %1068 = vmatprep.subr.bf16.mxu0 %v1966_v5 }
  0xb0   :  { %1069 = vmatpush1.bf16.msra.mxu0 %v1964_v8 }
  0xb1   :  { %1070 = vmatprep.subr.bf16.mxu0 %v1972_v9 }
  0xb4   :  { %1071 = vmatpush1.bf16.msra.mxu0 %v1970_v12 }
  0xb5   :  { %1081 = vmatprep.subr.bf16.mxu0 %v1982_v14  ;;  %v2090_v14 = vld [vmem:[#allocation4] sm:$0xff]  }
  0xb7   :  { %1073 = vmatmul.mubr.bf16.vlgmr.msra.gmra.mrb[0].mxu0 %v174_v17  ;;  %v2091_v17 = vld [vmem:[#allocation4 + $0x8] sm:$0xff]  }
  0xb8   :  { %1082 = vmatpush1.bf16.msra.mxu0 %v1980_v19  ;;  %1113 = vmatprep.mubr.bf16.mxu0 %v177_v20  ;;  %v2092_v19 = vld [vmem:[#allocation4 + $0x10] sm:$0xff]   ;;  %v2093_v20 = vld [vmem:[#allocation4 + $0x18] sm:$0xff]  }
  0xb9   :  { %1083 = vmatprep.subr.bf16.mxu0 %v1988_v21  ;;  %v2094_v21 = vld [vmem:[#allocation4 + $0x20] sm:$0xff]  }
  0xbc   :  { %1084 = vmatpush1.bf16.msra.mxu0 %v1986_v22  ;;  %v2095_v22 = vld [vmem:[#allocation4 + $0x28] sm:$0xff]  }
  0xbd   :  { %1085 = vmatprep.subr.bf16.mxu0 %v1994_v23  ;;  %v2096_v23 = vld [vmem:[#allocation4 + $0x30] sm:$0xff]  }
  0xc0   :  { %1086 = vmatpush1.bf16.msra.mxu0 %v1992_v24  ;;  %v2097_v24 = vld [vmem:[#allocation4 + $0x38] sm:$0xff]  }
  0xc1   :  { %1087 = vmatprep.subr.bf16.mxu0 %v2000_v25 }
  0xc4   :  { %1088 = vmatpush1.bf16.msra.mxu0 %v1998_v26  ;;  %v1730_v26 = vld [vmem:[%s2420_s4] ss:$0 sm:$0xff] }
  0xc5   :  { %1089 = vmatprep.subr.bf16.mxu0 %v2006_v51 }
  0xc8   :  { %1090 = vmatpush1.bf16.msra.mxu0 %v2004_v27 }
  0xc9   :  { %1091 = vmatprep.subr.bf16.mxu0 %v2012_v28 }
  0xcc   :  { %1092 = vmatpush1.bf16.msra.mxu0 %v2010_v29 }
  0xcd   :  { %1093 = vmatprep.subr.bf16.mxu0 %v2018_v30 }
  0xd0   :  { %1094 = vmatpush1.bf16.msra.mxu0 %v2016_v31 }
  0xd1   :  { %1095 = vmatprep.subr.bf16.mxu0 %v2024_v32  ;;  %v2098_v32 = vld [vmem:[#allocation6] sm:$0xff]  }
  0xd4   :  { %1096 = vmatpush1.bf16.msra.mxu0 %v2022_v33 }
  0xd5   :  { %1097 = vmatprep.subr.bf16.mxu0 %v2030_v34  ;;  %v2099_v34 = vld [vmem:[#allocation6 + $0x8] sm:$0xff]  }
  0xd8   :  { %1098 = vmatpush1.bf16.msra.mxu0 %v2028_v35  ;;  %v2100_v35 = vld [vmem:[#allocation6 + $0x10] sm:$0xff]  }
  0xd9   :  { %1099 = vmatprep.subr.bf16.mxu0 %v2036_v36  ;;  %v2101_v36 = vld [vmem:[#allocation6 + $0x18] sm:$0xff]  }
  0xdc   :  { %1100 = vmatpush1.bf16.msra.mxu0 %v2034_v37  ;;  %v2102_v37 = vld [vmem:[#allocation6 + $0x20] sm:$0xff]  }
  0xdd   :  { %1101 = vmatprep.subr.bf16.mxu0 %v2042_v38  ;;  %v2103_v38 = vld [vmem:[#allocation6 + $0x28] sm:$0xff]  }
  0xe0   :  { %1102 = vmatpush1.bf16.msra.mxu0 %v2040_v39  ;;  %v2104_v39 = vld [vmem:[#allocation6 + $0x30] sm:$0xff]  }
  0xe1   :  { %1103 = vmatprep.subr.bf16.mxu0 %v2048_v40  ;;  %v2105_v40 = vld [vmem:[#allocation6 + $0x38] sm:$0xff]  }
  0xe4   :  { %1104 = vmatpush1.bf16.msra.mxu0 %v2046_v41  ;;  %v1747_v41 = vld [vmem:[%s2422_s6] ss:$0 sm:$0xff] }
  0xe5   :  { %1105 = vmatprep.subr.bf16.mxu0 %v2054_v42 }
  0xe8   :  { %1106 = vmatpush1.bf16.msra.mxu0 %v2052_v43 }
  0xe9   :  { %1107 = vmatprep.subr.bf16.mxu0 %v2060_v44 }
  0xec   :  { %1108 = vmatpush1.bf16.msra.mxu0 %v2058_v45 }
  0xed   :  { %1109 = vmatprep.subr.bf16.mxu0 %v2066_v46 }
  0xf0   :  { %1110 = vmatpush1.bf16.msra.mxu0 %v2064_v48 }
  0xf1   :  { %1111 = vmatprep.subr.bf16.mxu0 %v2071_v49 }
  0xf4   :  { %1112 = vmatpush1.bf16.msra.mxu0 %v2069_v50  ;;  %v2186_v50 = vmov 1966171168  }
  0xf7   :  { %1114 = vmatmul.mubr.bf16.vlgmr.msra.gmra.mrb[0].mxu0 %v176_v52  ;;  %v1530_v52 = vunpack.c.l.s4 %v2186_v50 }
  0xf9   :  { %v1531_v18 = vunpack.c.0.s8 %v1530_v52 }
  0xfb   :  { %v1534_v55 = vsub.s32 %v1531_v18, %v2279_v15 }
 0x155   :  { %v992_v58 = vpop.f32.mrb[0].mxu1 }
 0x156   :  { %v994_v59 = vpop.f32.mrb[1].mxu1  ;;  %v993_v3 = vadd.f32 %v992_v58, %v311_v1 }
 0x157   :  { %v996_v60 = vpop.f32.mrb[2].mxu1  ;;  %v995_v4 = vadd.f32 %v994_v59, %v315_v2 }
 0x158   :  { %v997_v61 = vpop.f32.mrb[3].mxu1 }
 0x1ca   :  { %v1115_v5 = vpop.f32.mrb[0].mxu0 }
 0x1cb   :  { %v1848_v6 = vadd.f32 %v1115_v5, %v993_v3  ;;  %v1117_v7 = vpop.f32.mrb[1].mxu0 }
 0x1cc   :  { %v1850_v8 = vadd.f32 %v1117_v7, %v995_v4  ;;  %v1119_v9 = vpop.f32.mrb[2].mxu0 }
 0x1cd   :  { %v1122_v10 = vmax.f32 %v1848_v6, 0.0  ;;  %v1120_v11 = vpop.f32.mrb[3].mxu0 }
 0x1ce   :  { %v1123_v12 = vmax.f32 %v1850_v8, 0.0 }
 0x1cf   :  { %v1124_v16 = vpack.c.bf16 %v1122_v10, %v1122_v10 }
 0x1d0   :  { %v1125_v13 = vpack.c.bf16 %v1123_v12, %v1123_v12 }
 0x1d2   :  { %1293 = vmatprep.mubr.bf16.mxu1 %v1125_v13 }
 0x1d3   :  { %1294 = vmatmul.mubr.bf16.vlgmr.msra.gmra.mrb[4].mxu1 %v1124_v16 }
 0x1d4   :  { %1808 = vmatpush3.bf16.msra.mxu1 %v2090_v14  ;;  %1823 = vmatprep.mubr.msk.bf16.mxu1 %vm2185_vm0, %v2184_v57 }
 0x1d5   :  { %1809 = vmatprep.subr.bf16.mxu1 %v2184_v57 }
 0x1d8   :  { %1810 = vmatpush3.bf16.msra.mxu1 %v2091_v17 }
 0x1d9   :  { %1811 = vmatprep.subr.bf16.mxu1 %v2184_v57 }
 0x1dc   :  { %1812 = vmatpush3.bf16.msra.mxu1 %v2092_v19 }
 0x1dd   :  { %1813 = vmatprep.subr.bf16.mxu1 %v2184_v57 }
 0x1e0   :  { %1814 = vmatpush3.bf16.msra.mxu1 %v2093_v20 }
 0x1e1   :  { %1815 = vmatprep.subr.bf16.mxu1 %v2184_v57 }
 0x1e4   :  { %1816 = vmatpush3.bf16.msra.mxu1 %v2094_v21 }
 0x1e5   :  { %1817 = vmatprep.subr.bf16.mxu1 %v2184_v57 }
 0x1e8   :  { %1818 = vmatpush3.bf16.msra.mxu1 %v2095_v22 }
 0x1e9   :  { %1819 = vmatprep.subr.bf16.mxu1 %v2184_v57 }
 0x1ec   :  { %1820 = vmatpush3.bf16.msra.mxu1 %v2096_v23 }
 0x1ed   :  { %1821 = vmatprep.subr.bf16.mxu1 %v2184_v57 }
 0x1f0   :  { %1822 = vmatpush3.bf16.msra.mxu1 %v2097_v24 }
 0x1f1   :  { %1827 = vmatprep.subr.bf16.mxu1 %v2184_v57 }
 0x2a6   :  { %v1783_v25 = vpop.f32.mrb[4].mxu1 }
 0x2a7   :  { %v1784_v51 = vpop.f32.mrb[5].mxu1 }
 0x2a8   :  { %v1785_v27 = vadd.f32 %v1784_v51, %v1783_v25  ;;  %v1786_v28 = vpop.f32.mrb[6].mxu1 }
 0x2a9   :  { %v1787_v29 = vpop.f32.mrb[7].mxu1 }
 0x2aa   :  { %v1296_v30 = vadd.f32 %v1785_v27, %v1730_v26 }
 0x2ac   :  { %v1301_v31 = vmax.f32 %v1296_v30, 0.0 }
 0x2ae   :  { %v1302_v33 = vpack.c.bf16 %v1301_v31, %v1301_v31 }
 0x2b0   :  { %1824 = vmatmul.mubr.bf16.vlgmr.msra.gmra.mrb[8].mxu1 %v1302_v33 }
 0x2b1   :  { %1828 = vmatpush3.bf16.msra.mxu1 %v2098_v32  ;;  %1843 = vmatprep.mubr.msk.bf16.mxu1 %vm2185_vm0, %v2184_v57 }
 0x2b2   :  { %1829 = vmatprep.subr.bf16.mxu1 %v2184_v57 }
 0x2b5   :  { %1830 = vmatpush3.bf16.msra.mxu1 %v2099_v34 }
 0x2b6   :  { %1831 = vmatprep.subr.bf16.mxu1 %v2184_v57 }
 0x2b9   :  { %1832 = vmatpush3.bf16.msra.mxu1 %v2100_v35 }
 0x2ba   :  { %1833 = vmatprep.subr.bf16.mxu1 %v2184_v57 }
 0x2bd   :  { %1834 = vmatpush3.bf16.msra.mxu1 %v2101_v36 }
 0x2be   :  { %1835 = vmatprep.subr.bf16.mxu1 %v2184_v57 }
 0x2c1   :  { %1836 = vmatpush3.bf16.msra.mxu1 %v2102_v37 }
 0x2c2   :  { %1837 = vmatprep.subr.bf16.mxu1 %v2184_v57 }
 0x2c5   :  { %1838 = vmatpush3.bf16.msra.mxu1 %v2103_v38 }
 0x2c6   :  { %1839 = vmatprep.subr.bf16.mxu1 %v2184_v57 }
 0x2c9   :  { %1840 = vmatpush3.bf16.msra.mxu1 %v2104_v39 }
 0x2ca   :  { %1841 = vmatprep.subr.bf16.mxu1 %v2184_v57 }
 0x2cd   :  { %1842 = vmatpush3.bf16.msra.mxu1 %v2105_v40 }
 0x383   :  { %v1408_v42 = vpop.f32.mrb[8].mxu1 }
 0x384   :  { %v1409_v43 = vadd.f32 %v1747_v41, %v1408_v42  ;;  %v1825_v44 = vpop.f32.mrb[9].mxu1 }
 0x385   :  { %v1411_v45 = vpop.f32.mrb[10].mxu1 }
 0x386   :  { %v1414_v46 = vmax.f32 %v1409_v43, 0.0  ;;  %v1826_v48 = vpop.f32.mrb[11].mxu1 }
 0x388   :  { %v1415_v49 = vpack.c.bf16 %v1414_v46, %v1414_v46 }
 0x38a   :  { %1844 = vmatmul.mubr.bf16.vlgmr.msra.gmra.mrb[12].mxu1 %v1415_v49 }
 0x45d   :  { %v1521_v54 = vpop.f32.mrb[12].mxu1 }
 0x45e   :  { %v1522_v47 = vadd.f32 %v1756_v53, %v1521_v54  ;;  %v1845_v56 = vpop.f32.mrb[13].mxu1 }
 0x45f   :  { %v1524_v57 = vpop.f32.mrb[14].mxu1 }
 0x460   :  { %v1527_v58 = vpack.c.bf16 %v1522_v47, %v1522_v47  ;;  %v1846_v59 = vpop.f32.mrb[15].mxu1 }
 0x462   :  { %v1535_v60 = vrot.slane %v1527_v58, %v1534_v55 }
 0x464   :  { %1765 = vst.sshfl [vmem:[#allocation7] sm:$0x1 pattern:$0x73625140] %v1535_v60 }
 0x46b   :  { %v1578_v61 = vld [vmem:[#allocation7] sm:$0x1] }
 0x46c   :  { %1579 = vst [vmem:[%s2425_s9] sm:$0x1] %v1578_v61 }
 0x46d   :  { %1596 = vsyncpa [#allocation3], 1 }
 0x46e   :  { %1597 = vsyncpa [#allocation5], 1 }

</bundles_post_ra>
